<compile_context>
chip_gen: v7x
topology: tpu7x:2x2x1
jax: 0.10.0
libtpu: 0.0.40
codegen_flags: <defaults>
</compile_context>

<pallas_src>
import jax
import jax.numpy as jnp
from jax.experimental import pallas as pl
from jax.experimental.pallas import tpu as pltpu

D0 = 100                    # input feature dim (d0 in the PyTorch file)
D = 10                      # dictionary / output dim (d in the PyTorch file)
N = 200                     # batch size (n in the PyTorch file)

D_PAD = 128                 # output dim padded to lane width -> unmasked vst
MAX_SINGLE_BLOCK_N = 1024   # up to this batch, do the whole matmul in one grid step
TILE_N_LARGE = 512          # batch tile for large n (amortizes step overhead,
                            # fills the 2x256^2 MXUs on v6e/v7x, <2 MiB VMEM)


# ----------------------------- Pallas kernel ------------------------------- #

def _relu_matmul_kernel(x_ref, wt_ref, out_ref):
    """out = relu(X_tile @ W^T) with f32 MXU accumulation.

    x_ref : (tile_n, d0)     f32
    wt_ref: (d0, D_PAD)      f32  (resident across the whole grid)
    out   : (tile_n, D_PAD)  f32  (lane-dense -> unmasked stores)
    """
    y = jnp.dot(x_ref[...], wt_ref[...], preferred_element_type=jnp.float32)
    out_ref[...] = jnp.maximum(y, 0.0).astype(out_ref.dtype)


# ------------------------------ Wrapper ------------------------------------ #

def forward_projection(x, wt_pad):
    """relu(X @ W^T_pad).

    Small n (<= MAX_SINGLE_BLOCK_N): one grid step over the full batch.
    Large n: TILE_N_LARGE batch tiles on a parallel grid (v7x megacore split).
    """
    n, d0 = x.shape

    if n <= MAX_SINGLE_BLOCK_N:
        tile_n = n                       # single grid step, no batch padding
    else:
        tile_n = TILE_N_LARGE
        n_pad = tile_n * pl.cdiv(n, tile_n)
        if n_pad != n:
            x = jnp.pad(x, ((0, n_pad - n), (0, 0)))
        n = n_pad

    grid = (n // tile_n,)

    cost = pl.CostEstimate(
        flops=2 * n * d0 * D_PAD,
        transcendentals=0,
        bytes_accessed=4 * (n * d0 + d0 * D_PAD + n * D_PAD),
    )

    return pl.pallas_call(
        _relu_matmul_kernel,
        out_shape=jax.ShapeDtypeStruct((n, D_PAD), jnp.float32),
        grid=grid,
        in_specs=[
            # Last dim == full array dim (100) is legal -> no padded X copy.
            pl.BlockSpec((tile_n, d0), lambda i: (i, 0)),
            # Same block every step -> W^T stays VMEM-resident (no re-DMA).
            pl.BlockSpec((d0, D_PAD), lambda i: (0, 0)),
        ],
        out_specs=pl.BlockSpec((tile_n, D_PAD), lambda i: (i, 0)),
        compiler_params=pltpu.CompilerParams(
            dimension_semantics=("parallel",)
        ),
        cost_estimate=cost,
    )(x, wt_pad)


def aa_forward(x, dictionary):
    """Full AA.forward.

    Tiny dictionary-side algebra (and the matrix inverse, which has no Pallas
    primitive) in plain JAX; the n-scaling matmul + ReLU in one Pallas kernel.
    """
    n, d0 = x.shape
    _, d = dictionary.shape

    dtd = dictionary.T @ dictionary                  # (d, d)
    # TODO(synk): no Pallas matrix-inverse primitive; tiny (d, d) inverse stays in JAX.
    dtd_inv = jnp.linalg.inv(dtd)                    # (d, d)
    dtd_inv_dt = dtd_inv @ dictionary.T              # (d, d0) -- reference ordering
    wt = dtd_inv_dt.T                                # (d0, d)

    # Only the tiny weight is zero-padded (single fusible HLO) to a lane-dense
    # (d0, 128) slab; padding columns contribute exactly 0 and are sliced off.
    wt_pad = jnp.pad(wt, ((0, 0), (0, D_PAD - d)))

    out_pad = forward_projection(x, wt_pad)          # (n[_pad], D_PAD)
    return out_pad[:n, :d]


def aa_forward_reference(x, dictionary):
    dtd = dictionary.T @ dictionary
    dtd_inv = jnp.linalg.inv(dtd)
    dtd_inv_dt = dtd_inv @ dictionary.T
    return jnp.maximum(x @ dtd_inv_dt.T, 0.0)


# -------------------------------- Main -------------------------------------- #

if __name__ == "__main__":
    key = jax.random.PRNGKey(0)
    k_x, k_w = jax.random.split(key)

    # X ~ torch.rand(n, d0): uniform [0, 1)
    x = jax.random.uniform(k_x, (N, D0), dtype=jnp.float32)

    # nn.Linear(d0, d).weight ~ U(-1/sqrt(d0), 1/sqrt(d0)), shape (d, d0);
    # Dictionary = weight.T, shape (d0, d).
    bound = 1.0 / jnp.sqrt(jnp.float32(D0))
    fc_weight = jax.random.uniform(
        k_w, (D, D0), dtype=jnp.float32, minval=-bound, maxval=bound
    )
    dictionary = fc_weight.T  # (d0, d)

    # Jit the whole forward so the weight pad / inverse / output slice fuse
    # around the Pallas custom call instead of extra HBM round-trips.
    aa_forward_jit = jax.jit(aa_forward)

    out = aa_forward_jit(x, dictionary)
    out = jax.block_until_ready(out)

    ref = aa_forward_reference(x, dictionary)
    assert out.shape == (N, D)
    assert jnp.allclose(out, ref, atol=1e-4, rtol=1e-4), "mismatch vs JAX reference"

    print("KERNEL_OK")
</pallas_src>

<mosaic_0001>
module attributes {stable_mosaic.version = 11 : i64} {
  func.func @_relu_matmul_kernel(%arg0: i32, %arg1: memref<200x100xf32, #tpu.memory_space<vmem>>, %arg2: memref<100x128xf32, #tpu.memory_space<vmem>>, %arg3: memref<200x128xf32, #tpu.memory_space<vmem>>) attributes {dimension_semantics = [#tpu.dimension_semantics<parallel>], iteration_bounds = array<i64: 1>, scalar_prefetch = 0 : i64, scratch_operands = 0 : i64, tpu.core_type = #tpu.core_type<tc>, window_params = [{transform_indices = @transform_0, window_bounds = array<i64: 200, 100>}, {pipeline_mode = #tpu.pipeline_mode<synchronous>, transform_indices = @transform_1, window_bounds = array<i64: 100, 128>}, {transform_indices = @transform_2, window_bounds = array<i64: 200, 128>}]} {
    %c0 = arith.constant 0 : index
    %c0_0 = arith.constant 0 : index
    %0 = vector.load %arg1[%c0, %c0_0] : memref<200x100xf32, #tpu.memory_space<vmem>>, vector<200x100xf32>
    %c0_1 = arith.constant 0 : index
    %c0_2 = arith.constant 0 : index
    %1 = vector.load %arg2[%c0_1, %c0_2] : memref<100x128xf32, #tpu.memory_space<vmem>>, vector<100x128xf32>
    %cst = arith.constant dense<0.000000e+00> : vector<200x128xf32>
    %2 = tpu.matmul %0, %1, %cst {dimension_numbers = #tpu.dot_dimension_numbers<[1], [0], [0], [1], [0, 0, 1, 1], [], []>} : vector<200x100xf32>, vector<100x128xf32>, vector<200x128xf32> -> vector<200x128xf32>
    %cst_3 = arith.constant 0.000000e+00 : f32
    %3 = vector.broadcast %cst_3 : f32 to vector<200x128xf32>
    %4 = arith.maximumf %2, %3 : vector<200x128xf32>
    %c0_4 = arith.constant 0 : index
    %c0_5 = arith.constant 0 : index
    %5 = vector.load %arg3[%c0_4, %c0_5] : memref<200x128xf32, #tpu.memory_space<vmem>>, vector<200x128xf32>
    tpu.vector_store %arg3[%c0_4, %c0_5], %4 {strides = array<i32>} : memref<200x128xf32, #tpu.memory_space<vmem>>, vector<200x128xf32>,
    return
  }
  func.func @transform_0(%arg0: i32) -> (i32, i32) {
    %c0_i32 = arith.constant 0 : i32
    %c0_i32_0 = arith.constant 0 : i32
    return %arg0, %c0_i32 : i32, i32
  }
  func.func @transform_1(%arg0: i32) -> (i32, i32) {
    %c0_i32 = arith.constant 0 : i32
    %c0_i32_0 = arith.constant 0 : i32
    %c0_i32_1 = arith.constant 0 : i32
    return %c0_i32, %c0_i32_0 : i32, i32
  }
  func.func @transform_2(%arg0: i32) -> (i32, i32) {
    %c0_i32 = arith.constant 0 : i32
    %c0_i32_0 = arith.constant 0 : i32
    return %arg0, %c0_i32 : i32, i32
  }
}

</mosaic_0001>

<bundles_post_ra>
// kernel: custom-call.11
= control target key start
LH: loop header
LB: loop body
LE: loop exit
PB: predicated region body
PF: predicated region fallthrough
CT: control target
= control target key end

     0   :  { %5 = vsyncpa [#allocation4], 0  ;;  %s878_s0 = inlined_call_operand.vmem [shape: f32[10,10], index: 0, kind: input, shape index: {}]   ;;  %s879_s1 = inlined_call_operand.vmem [shape: f32[10,10], index: 1, kind: output, shape index: {0}]   ;;  %s880_s2 = inlined_call_operand.hbm [shape: s32[10], index: 2, kind: output, shape index: {1}]   ;;  %s881_s3 = inlined_call_operand.vmem [shape: s32[10], index: 3, kind: output, shape index: {2}]  }
   0x1   :  { %s19_s14 = scalar_lea.vmem %s878_s0, 8 }
   0x2   :  { %p454_p0 = scmp.gt.s32.totalorder %s878_s0, %s19_s14 }
   0x3   :  { %s747_s17 = smov (!%p454_p0), [#allocation0]   ;;  %s751_s20 = smov (!%p454_p0), %s878_s0  }
   0x4   :  { %455 = sbr.rel (%p454_p0) target bundleno = 21 (0x15), region = 157 }
   0xb LB: > { %v53_v0 = vld [vmem:[%s753_s20] sm:$0xff]  ;;  %s55_s20 = scalar_lea.vmem %s753_s20, 8   ;;  %s753_s20 = sphi %s751_s20, %s55_s20   ;;  %s749_s17 = sphi %s747_s17, %s56_s17  }
   0xc   : > { %54 = vst [vmem:[%s749_s17] sm:$0xff] %v53_v0  ;;  %s56_s17 = scalar_lea.vmem %s749_s17, 8   ;;  %p50_p1 = scmp.gt.s32.totalorder %s55_s20, %s19_s14 }
   0xe   :  { %52 = sbr.rel (!%p50_p1) target bundleno = 11 (0xb), region = 163 }
  0x15 PF:  { %v68_v1 = vld [vmem:[#allocation0] sm:$0xff]  ;;  %v72_v2 = vld [vmem:[#allocation0 + $0x8] sm:$0xff]  ;;  %v75_v3 = vlaneseq  ;;  %v771_v4 = vmov 0   ;;  %s755_s0 = smov 0  }
  0x16   :  { %69 = vst [vmem:[#allocation1] sm:$0xff] %v68_v1  ;;  %73 = vst [vmem:[#allocation1 + $0x8] sm:$0xff] %v72_v2 }
  0x17   :  { %74 = vst [vmem:[#allocation2] sm:$0x1] %v771_v4  ;;  %v803_v5 = vshrl.u32 %v75_v3, 7 }
  0x18 LB: > { %s512_s21 = sshll.u32 %s757_s0, 3  ;;  %s83_s0 = sadd.s32 1, %s757_s0   ;;  %s757_s0 = sphi %s755_s0, %s83_s0  }
  0x19   : > { %v87_v6 = vstv %s512_s21  ;;  %s85_s22 = scalar_lea.vmem [#allocation7], %s512_s21  ;;  %p80_p2 = scmp.ge.s32.totalorder %s83_s0, 2  }
  0x1a   : > { %v88_v7 = vadd.s32 %v87_v6, %v803_v5  ;;  %s806_s23 = smov (%p80_p2), 0  }
  0x1b   :  { %82 = sbr.rel (!%p80_p2) target bundleno = 24 (0x18), region = 174 }
  0x1c   : > { %89 = vst [vmem:[%s85_s22] sm:$0xff] %v88_v7 }
  0x22 LB: > { %v100_v8 = vld [vmem:[#allocation1] sm:$0xff]  ;;  %v112_v9 = vld [vmem:[#allocation1 + $0x8] sm:$0xff]  ;;  %v812_v10 = vadd.s32 8, %v803_v5  ;;  %v815_v12 = vstv %s761_s23  ;;  %s158_s24 = ssub.s32 128, %s761_s23  ;;  %v164_v45 = vand.u32 127, %v75_v3  ;;  %s170_s25 = scalar_lea.vmem [#allocation1], %s761_s23  ;;  %s761_s23 = sphi %s806_s23, %s95_s23  }
  0x23   : > { %v101_v11 = vand.u32 2147483647, %v100_v8  ;;  %v113_v13 = vand.u32 2147483647, %v112_v9  ;;  %vm104_vm1 = vcmp.ge.s32.totalorder %v803_v5, %v815_v12  ;;  %v167_v48 = vld [vmem:[#allocation2] ss:$0 sm:$0xff] }
  0x24   : > { %vm117_vm0 = vcmp.lt.s32.totalorder %v812_v10, 10  ;;  %vm116_vm3 = vcmp.ge.s32.totalorder %v812_v10, %v815_v12  ;;  %vm188_vm15 = vcmp.gt.s32.totalorder %v164_v45, %v815_v12  ;;  %v172_v49 = vld [vmem:[%s170_s25] ss:$0 sm:$0xff]  ;;  %s176_s27 = scalar_lea.vmem [#allocation7], %s761_s23  ;;  %s95_s23 = sadd.s32 1, %s761_s23  }
  0x25   : > { %vm514_vm2 = vcmp.gt.f32.partialorder %v101_v11, -inf  ;;  %vm118_vm5 = vmand %vm116_vm3, %vm117_vm0  ;;  %vm211_vm0 = vcmp.gt.s32.totalorder %v812_v10, %v815_v12  ;;  %v178_v50 = vld [vmem:[%s176_s27] ss:$0 sm:$0xff]  ;;  %p92_p3 = scmp.ge.s32.totalorder %s95_s23, 10  }
  0x26   : > { %vm108_vm4 = vmand %vm104_vm1, %vm514_vm2  ;;  %vm165_vm1 = vcmp.eq.s32.totalorder %v164_v45, %v815_v12  ;;  %s763_s5 = smov (%p92_p3), %s879_s1   ;;  %s767_s6 = smov (%p92_p3), [#allocation1]  }
  0x27   : > { %v109_v14 = vsel %vm108_vm4, %v803_v5, %v815_v12  ;;  %v110_v15 = vsel %vm108_vm4, %v101_v11, -inf  ;;  %vm836_vm2 = vmand %vm211_vm0, %vm165_vm1  ;;  %vm196_vm4 = vcmp.gt.s32.totalorder %v803_v5, %v815_v12 }
  0x28   : > { %vm119_vm6 = vcmp.lt.f32.partialorder %v110_v15, %v113_v13 }
  0x29   : > { %vm120_vm7 = vmand %vm118_vm5, %vm119_vm6 }
  0x2a   : > { %v121_v16 = vsel %vm120_vm7, %v812_v10, %v109_v14  ;;  %v122_v17 = vsel %vm120_vm7, %v113_v13, %v110_v15  ;;  %vm200_vm6 = vmand %vm196_vm4, %vm165_vm1 }
  0x2b   : > { %v123_v18 = vrot.slane %v122_v17, 1  ;;  %v124_v19 = vrot.slane %v121_v16, 1 }
  0x2d   : > { %vm125_vm8 = vcmp.ge.f32.partialorder %v123_v18, %v122_v17  ;;  %v128_v20 = vrot.slane %v123_v18, 1  ;;  %v129_v21 = vrot.slane %v124_v19, 1 }
  0x2e   : > { %v126_v22 = vsel %vm125_vm8, %v123_v18, %v122_v17  ;;  %v127_v23 = vsel %vm125_vm8, %v124_v19, %v121_v16 }
  0x2f   : > { %vm130_vm9 = vcmp.ge.f32.partialorder %v128_v20, %v126_v22  ;;  %v133_v24 = vrot.slane %v128_v20, 1  ;;  %v134_v25 = vrot.slane %v129_v21, 1 }
  0x30   : > { %v131_v26 = vsel %vm130_vm9, %v128_v20, %v126_v22  ;;  %v132_v27 = vsel %vm130_vm9, %v129_v21, %v127_v23 }
  0x31   : > { %vm135_vm10 = vcmp.ge.f32.partialorder %v133_v24, %v131_v26  ;;  %v138_v28 = vrot.slane %v133_v24, 1  ;;  %v139_v29 = vrot.slane %v134_v25, 1 }
  0x32   : > { %v136_v30 = vsel %vm135_vm10, %v133_v24, %v131_v26  ;;  %v137_v31 = vsel %vm135_vm10, %v134_v25, %v132_v27 }
  0x33   : > { %vm140_vm11 = vcmp.ge.f32.partialorder %v138_v28, %v136_v30  ;;  %v143_v32 = vrot.slane %v138_v28, 1  ;;  %v144_v33 = vrot.slane %v139_v29, 1 }
  0x34   : > { %v141_v34 = vsel %vm140_vm11, %v138_v28, %v136_v30  ;;  %v142_v35 = vsel %vm140_vm11, %v139_v29, %v137_v31 }
  0x35   : > { %vm145_vm12 = vcmp.ge.f32.partialorder %v143_v32, %v141_v34  ;;  %v148_v36 = vrot.slane %v143_v32, 1  ;;  %v149_v37 = vrot.slane %v144_v33, 1 }
  0x36   : > { %v146_v38 = vsel %vm145_vm12, %v143_v32, %v141_v34  ;;  %v147_v39 = vsel %vm145_vm12, %v144_v33, %v142_v35 }
  0x37   : > { %vm150_vm13 = vcmp.ge.f32.partialorder %v148_v36, %v146_v38  ;;  %v153_v40 = vrot.slane %v148_v36, 1  ;;  %v154_v41 = vrot.slane %v149_v37, 1 }
  0x38   : > { %v151_v42 = vsel %vm150_vm13, %v148_v36, %v146_v38  ;;  %v152_v43 = vsel %vm150_vm13, %v149_v37, %v147_v39 }
  0x39   : > { %vm155_vm14 = vcmp.ge.f32.partialorder %v153_v40, %v151_v42 }
  0x3a   : > { %v157_v44 = vsel %vm155_vm14, %v154_v41, %v152_v43 }
  0x3b   : > { %159 = vrot.lane.b32.xlu0 %v157_v44, %s158_s24 }
  0xad   : > { %v160_v47 = vpop.permute.xlu0 %159 }
  0xae   : > { %522 = vpush %v160_v47 }
  0xdf   : > { %s523_s26 = spop %522 }
  0xe0   : > { %v166_v51 = vstv %s523_s26  ;;  %s171_s28 = scalar_lea.vmem [#allocation1], %s523_s26  ;;  %s177_s29 = scalar_lea.vmem [#allocation7], %s523_s26 }
  0xe1   : > { %v168_v52 = vsel %vm165_vm1, %v166_v51, %v167_v48  ;;  %v173_v53 = vld [vmem:[%s171_s28] ss:$0 sm:$0xff] }
  0xe2   : > { %v179_v54 = vld [vmem:[%s177_s29] ss:$0 sm:$0xff]  ;;  %169 = vst [vmem:[#allocation2] sm:$0x1] %v168_v52  ;;  %174 = vst [vmem:[%s171_s28] sm:$0x1] %v172_v49  ;;  %vm182_vm3 = vcmp.ne.f32.partialorder %v173_v53, 0.0 }
  0xe3   : > { %180 = vst [vmem:[%s177_s29] sm:$0x1] %v178_v50  ;;  %175 = vst [vmem:[%s170_s25] sm:$0x1] %v173_v53  ;;  %v189_v2 = vsel %vm188_vm15, %v173_v53, 0.0 }
  0xe4   : > { %181 = vst [vmem:[%s176_s27] sm:$0x1] %v179_v54  ;;  %vm183_vm5 = vmand %vm165_vm1, %vm182_vm3 }
  0xe5   : > { %v184_v55 = vsel %vm183_vm5, %v173_v53, 1.0 }
  0xe6   : > { %v212_v56 = vsel %vm211_vm0, %v184_v55, 1.0  ;;  %v197_v57 = vsel %vm196_vm4, %v184_v55, 1.0 }
  0xe7   : > { %655 = vrcp.f32 %v212_v56 }
  0xe8   : > { %657 = vrcp.f32 %v197_v57 }
  0xe9   :  { %v275_v12 = vld [vmem:[#allocation2] sm:$0x1] (%p92_p3) }
  0xea   : > { %v208_v59 = vld [vmem:[#allocation1 + $0x8] sm:$0xff]  ;;  %v193_v62 = vld [vmem:[#allocation1] sm:$0xff]  ;;  %277 = vst [vmem:[#allocation3] sm:$0x1] (%p92_p3), %v275_v12 }
  0xeb   :  { %v222_v11 = vld [vmem:[#allocation7] sm:$0xff] (%p92_p3)  ;;  %v224_v13 = vld [vmem:[#allocation7 + $0x8] sm:$0xff] (%p92_p3) }
  0xf1   : > { %v656_v58 = vpop.eup %655 }
  0xf2   : > { %v658_v60 = vpop.eup %657  ;;  %v214_v61 = vmul.f32 %v656_v58, %v208_v59 }
  0xf3   : > { %v199_v63 = vmul.f32 %v658_v60, %v193_v62 }
  0xf4   : > { %v216_v0 = vsel %vm836_vm2, %v214_v61, 0.0 }
  0xf5   : > { %217 = vadd.xlane.f32.xlu1 %v216_v0  ;;  %v201_v1 = vsel %vm200_vm6, %v199_v63, 0.0 }
  0xf6   : > { %202 = vadd.xlane.f32.xlu0 %v201_v1 }
 0x123   :  { %239 = vxpose.xlu0.b32.start [1/2] (short) (narrow) (%p92_p3), %v222_v11, 8 }
 0x127   :  { %240 = vxpose.xlu0.b32.end [2/2] (short) (narrow) (%p92_p3), %v224_v13, 8 }
 0x182   : > { %v218_v4 = vpop.xlane.xlu1 %217  ;;  %94 = sbr.rel (!%p92_p3) target bundleno = 34 (0x22), region = 185 }
 0x183   : > { %v219_v6 = vmul.f32 %v218_v4, %v189_v2  ;;  %v203_v7 = vpop.xlane.xlu0 %202 }
 0x184   : > { %v204_v8 = vmul.f32 %v203_v7, %v189_v2 }
 0x185   : > { %v220_v9 = vsub.f32 %v214_v61, %v219_v6 }
 0x186   : > { %v205_v10 = vsub.f32 %v199_v63, %v204_v8 }
 0x187   : > { %221 = vst [vmem:[#allocation1 + $0x8] sm:$0xff] %v220_v9 }
 0x188   : > { %206 = vst [vmem:[#allocation1] sm:$0xff] %v205_v10 }
 0x1a3   :  { %v255_v14 = vpop.trf.xlu0 }
 0x1a4   :  { %271 = vst [vmem:[#allocation5] sm:$0x1] %v255_v14 }
 0x1ab   :  { %v281_v15 = vld [vmem:[#allocation5] sm:$0x1] }
 0x1ac   :  { %283 = vst [vmem:[#allocation6] sm:$0x1] %v281_v15 }
 0x1ad LB: > { %v331_v16 = vld [vmem:[%s769_s6] sm:$0xff]  ;;  %s333_s6 = scalar_lea.vmem %s769_s6, 8   ;;  %s769_s6 = sphi %s767_s6, %s333_s6   ;;  %s765_s5 = sphi %s763_s5, %s334_s5  }
 0x1ae   : > { %332 = vst [vmem:[%s765_s5] sm:$0xff] %v331_v16  ;;  %s334_s5 = scalar_lea.vmem %s765_s5, 8   ;;  %p328_p4 = scmp.gt.s32.totalorder %s333_s6, [#allocation1 + $0x8] }
 0x1af   :  { %s772_s7 = smov (%p328_p4), [#allocation3]  }
 0x1b0   :  { %330 = sbr.rel (!%p328_p4) target bundleno = 429 (0x1ad), region = 207  ;;  %s351_s8 = sshll.u32 (%p328_p4), %s772_s7, 4  ;;  %s352_s8 = int_to_ptr.vmem [resolvable:$true] %s351_s8 }
 0x1b1   :  { %s659_s1 = scalar_lea.vmem (%p328_p4), %s352_s8, 16  ;;  %s663_s11 = scalar_lea.vmem (%p328_p4), %s352_s8, 32 }
 0x1b2   :  { %p660_p5 = scmp.ne.s32.totalorder (%p328_p4), %s352_s8, %s659_s1  ;;  %p664_p6 = scmp.lt.s32.totalorder (%p328_p4), %s352_s8, %s352_s8 }
 0x1b3   :  { %v417_v3 = vld [vmem:[#allocation6] sm:$0x1] (%p328_p4)  ;;  %p665_p7 = scmp.lt.s32.totalorder (%p328_p4), %s663_s11, %s659_s1 }
 0x1b4   :  { %418 = vst [vmem:[%s881_s3] sm:$0x1] (%p328_p4), %v417_v3 }
 0x1b5   :  { %p666_p8 = por (%p328_p4), %p665_p7, %p664_p6 }
 0x1b7   :  { %p667_p9 = pnand %p666_p8, %p660_p5 }
 0x1b9   :  { %670 = shalt.err (!%p667_p9)
}
 0x1ba   :  { %s671_s14 = scalar_lea.hbm %s880_s2, 16 }
 0x1bb   :  { %p672_p10 = scmp.ne.s32.totalorder %s880_s2, %s671_s14  ;;  %p675_p11 = scmp.lt.u32.totalorder %s671_s14, %s880_s2 }
 0x1bd   :  { %p677_p12 = pnand %p675_p11, %p672_p10 }
 0x1bf   :  { %680 = shalt.err (!%p677_p12)
}
 0x1c0   :  { %354 = dma.vmem_to_hbm [thread:$0]  %s352_s8, 16, %s880_s2, [#allocation4]  }
 0x1c1   :  { %745 = dma.done.wait [#allocation4], 16  }
 0x1c2   :  { %746 = vsyncadd [#allocation4], 4294967280 }
 0x1c3   :  { %424 = vsyncpa [#allocation4], 1 }

// kernel: custom-call.12
= control target key start
LH: loop header
LB: loop body
LE: loop exit
PB: predicated region body
PF: predicated region fallthrough
CT: control target
= control target key end

     0   :  { %v38_v0 = vlaneseq  ;;  %v271_v17 = vmov -1.0   ;;  %v272_v23 = vmov 0.0   ;;  %s336_s0 = inlined_call_operand.vmem [shape: f32[1,10,10], index: 0, kind: input, shape index: {}]   ;;  %s337_s1 = inlined_call_operand.vmem [shape: f32[1,10,10], index: 1, kind: output, shape index: {}]  }
   0x1   :  { %v33_v3 = vld [vmem:[%s336_s0 + $0x8] sm:$0xff]  ;;  %v31_v5 = vld [vmem:[%s336_s0] sm:$0xff] }
   0x2   :  { %v283_v1 = vand.u32 127, %v38_v0  ;;  %v42_v2 = vshrl.u32 %v38_v0, 7 }
   0x4   :  { %vm40_vm0 = vcmp.lt.s32.totalorder %v283_v1, 10  ;;  %v59_v4 = vadd.s32 8, %v42_v2  ;;  %vm49_vm1 = vcmp.le.s32.totalorder %v42_v2, %v283_v1  ;;  %vm44_vm5 = vcmp.eq.s32.totalorder %v42_v2, %v283_v1 }
   0x5   :  { %vm293_vm2 = vmand %vm49_vm1, %vm40_vm0  ;;  %v46_v10 = vsel %vm44_vm5, %v31_v5, 0.0  ;;  %vm86_vm7 = vcmp.eq.s32.totalorder %v283_v1, 9  ;;  %vm76_vm9 = vcmp.eq.s32.totalorder %v283_v1, %v42_v2  ;;  %vm94_vm10 = vcmp.eq.s32.totalorder %v283_v1, 8 }
   0x6   :  { %vm60_vm3 = vcmp.eq.s32.totalorder %v59_v4, %v283_v1  ;;  %vm65_vm4 = vcmp.le.s32.totalorder %v59_v4, %v283_v1  ;;  %v51_v7 = vsel %vm293_vm2, %v31_v5, 0.0  ;;  %vm83_vm8 = vcmp.eq.s32.totalorder %v283_v1, %v59_v4 }
   0x7   :  { %v62_v8 = vsel %vm60_vm3, %v33_v3, 0.0  ;;  %vm66_vm6 = vmand %vm65_vm4, %vm40_vm0  ;;  %v87_v18 = vsel %vm86_vm7, 1.0, %v271_v17  ;;  %v77_v24 = vsel %vm76_vm9, -1.0, %v272_v23  ;;  %vm104_vm11 = vcmp.eq.s32.totalorder %v283_v1, 7 }
   0x8   :  { %v67_v9 = vsel %vm66_vm6, %v33_v3, 0.0  ;;  %63 = vadd.xlane.f32.xlu0 %v62_v8  ;;  %v88_v19 = vsel %vm83_vm8, %v87_v18, 0.0  ;;  %vm118_vm12 = vcmp.eq.s32.totalorder %v283_v1, 6  ;;  %vm132_vm13 = vcmp.eq.s32.totalorder %v283_v1, 5 }
   0x9   :  { %vm146_vm14 = vcmp.eq.s32.totalorder %v283_v1, 4  ;;  %vm160_vm15 = vcmp.eq.s32.totalorder %v283_v1, 3  ;;  %vm174_vm0 = vcmp.eq.s32.totalorder %v283_v1, 2  ;;  %vm188_vm1 = vcmp.eq.s32.totalorder %v283_v1, 1 }
   0xa   :  { %vm201_vm2 = vcmp.eq.s32.totalorder %v283_v1, 0 }
   0xc   :  { %47 = vadd.xlane.f32.xlu0 %v46_v10 }
  0x95   :  { %v302_v11 = vpop.xlane.xlu0 %63 }
  0x96   :  { %267 = vrcp.f32 %v302_v11  ;;  %vm217_vm4 = vweird.f32 %v302_v11 }
  0x99   :  { %v305_v12 = vpop.xlane.xlu0 %47 }
  0x9a   :  { %269 = vrcp.f32 %v305_v12  ;;  %vm212_vm3 = vweird.f32 %v305_v12 }
  0xa0   :  { %v308_v13 = vpop.eup %267 }
  0xa1   :  { %v69_v14 = vmul.f32 %v308_v13, %v67_v9 }
  0xa3   :  { %70 = vst [vmem:[#allocation2 + $0x8] sm:$0xff] %v69_v14 }
  0xa4   :  { %v311_v15 = vpop.eup %269 }
  0xa5   :  { %v53_v16 = vmul.f32 %v311_v15, %v51_v7 }
  0xa7   :  { %54 = vst [vmem:[#allocation2] sm:$0xff] %v53_v16 }
  0xaa   :  { %v90_v20 = vld [vmem:[#allocation2 + $0x8] ss:$0 sm:$0xff] }
  0xab   :  { %v91_v21 = vxor.u32 2147483648, %v90_v20 }
  0xad   :  { %v95_v22 = vmul.f32 %v91_v21, %v88_v19 }
  0xae   :  { %v100_v25 = vld [vmem:[#allocation2 + $0x7] ss:$0 sm:$0xff]  ;;  %v114_v30 = vld [vmem:[#allocation2 + $0x6] ss:$0 sm:$0xff]  ;;  %v128_v38 = vld [vmem:[#allocation2 + $0x5] ss:$0 sm:$0xff] }
  0xaf   :  { %96 = vadd.xlane.f32.xlu1 %v95_v22  ;;  %v101_v26 = vxor.u32 2147483648, %v100_v25  ;;  %v115_v33 = vxor.u32 2147483648, %v114_v30  ;;  %v129_v41 = vxor.u32 2147483648, %v128_v38  ;;  %v142_v46 = vld [vmem:[#allocation2 + $0x4] ss:$0 sm:$0xff] }
  0xb0   :  { %v143_v49 = vxor.u32 2147483648, %v142_v46  ;;  %v156_v54 = vld [vmem:[#allocation2 + $0x3] ss:$0 sm:$0xff]  ;;  %v170_v62 = vld [vmem:[#allocation2 + $0x2] ss:$0 sm:$0xff] }
  0xb1   :  { %v105_v27 = vmul.f32 %v101_v26, %v77_v24  ;;  %v157_v57 = vxor.u32 2147483648, %v156_v54  ;;  %v171_v2 = vxor.u32 2147483648, %v170_v62  ;;  %v184_v7 = vld [vmem:[#allocation2 + $0x1] ss:$0 sm:$0xff] }
  0xb2   :  { %v185_v10 = vxor.u32 2147483648, %v184_v7 }
  0xb3   :  { %106 = vadd.xlane.f32.xlu1 %v105_v27 }
 0x13c   :  { %v97_v28 = vpop.xlane.xlu1 %96 }
 0x13d   :  { %v98_v29 = vsel %vm94_vm10, %v97_v28, %v88_v19  ;;  %v197_v19 = vld [vmem:[#allocation2] ss:$0 sm:$0xff] }
 0x13e   :  { %v109_v31 = vmul.f32 %v101_v26, %v98_v29  ;;  %v198_v22 = vxor.u32 2147483648, %v197_v19 }
 0x140   :  { %110 = vadd.xlane.f32.xlu0 %v109_v31  ;;  %v107_v32 = vpop.xlane.xlu1 %106 }
 0x141   :  { %v108_v34 = vsel %vm104_vm11, %v107_v32, %v77_v24 }
 0x142   :  { %v119_v35 = vmul.f32 %v115_v33, %v108_v34 }
 0x144   :  { %120 = vadd.xlane.f32.xlu1 %v119_v35 }
 0x1cd   :  { %v111_v36 = vpop.xlane.xlu0 %110 }
 0x1ce   :  { %v112_v37 = vsel %vm104_vm11, %v111_v36, %v98_v29 }
 0x1cf   :  { %v123_v39 = vmul.f32 %v115_v33, %v112_v37 }
 0x1d1   :  { %124 = vadd.xlane.f32.xlu0 %v123_v39  ;;  %v121_v40 = vpop.xlane.xlu1 %120 }
 0x1d2   :  { %v122_v42 = vsel %vm118_vm12, %v121_v40, %v108_v34 }
 0x1d3   :  { %v133_v43 = vmul.f32 %v129_v41, %v122_v42 }
 0x1d5   :  { %134 = vadd.xlane.f32.xlu1 %v133_v43 }
 0x25e   :  { %v125_v44 = vpop.xlane.xlu0 %124 }
 0x25f   :  { %v126_v45 = vsel %vm118_vm12, %v125_v44, %v112_v37 }
 0x260   :  { %v137_v47 = vmul.f32 %v129_v41, %v126_v45 }
 0x262   :  { %138 = vadd.xlane.f32.xlu0 %v137_v47  ;;  %v135_v48 = vpop.xlane.xlu1 %134 }
 0x263   :  { %v136_v50 = vsel %vm132_vm13, %v135_v48, %v122_v42 }
 0x264   :  { %v147_v51 = vmul.f32 %v143_v49, %v136_v50 }
 0x266   :  { %148 = vadd.xlane.f32.xlu1 %v147_v51 }
 0x2ef   :  { %v139_v52 = vpop.xlane.xlu0 %138 }
 0x2f0   :  { %v140_v53 = vsel %vm132_vm13, %v139_v52, %v126_v45 }
 0x2f1   :  { %v151_v55 = vmul.f32 %v143_v49, %v140_v53 }
 0x2f3   :  { %152 = vadd.xlane.f32.xlu0 %v151_v55  ;;  %v149_v56 = vpop.xlane.xlu1 %148 }
 0x2f4   :  { %v150_v58 = vsel %vm146_vm14, %v149_v56, %v136_v50 }
 0x2f5   :  { %v161_v59 = vmul.f32 %v157_v57, %v150_v58 }
 0x2f7   :  { %162 = vadd.xlane.f32.xlu1 %v161_v59 }
 0x380   :  { %v153_v60 = vpop.xlane.xlu0 %152 }
 0x381   :  { %v154_v61 = vsel %vm146_vm14, %v153_v60, %v140_v53 }
 0x382   :  { %v165_v63 = vmul.f32 %v157_v57, %v154_v61 }
 0x384   :  { %166 = vadd.xlane.f32.xlu0 %v165_v63  ;;  %v163_v0 = vpop.xlane.xlu1 %162 }
 0x385   :  { %v164_v3 = vsel %vm160_vm15, %v163_v0, %v150_v58 }
 0x386   :  { %v175_v4 = vmul.f32 %v171_v2, %v164_v3 }
 0x388   :  { %176 = vadd.xlane.f32.xlu1 %v175_v4 }
 0x411   :  { %v167_v5 = vpop.xlane.xlu0 %166 }
 0x412   :  { %v168_v6 = vsel %vm160_vm15, %v167_v5, %v154_v61 }
 0x413   :  { %v179_v8 = vmul.f32 %v171_v2, %v168_v6 }
 0x415   :  { %180 = vadd.xlane.f32.xlu0 %v179_v8  ;;  %v177_v9 = vpop.xlane.xlu1 %176 }
 0x416   :  { %v178_v14 = vsel %vm174_vm0, %v177_v9, %v164_v3 }
 0x417   :  { %v189_v16 = vmul.f32 %v185_v10, %v178_v14 }
 0x419   :  { %190 = vadd.xlane.f32.xlu1 %v189_v16 }
 0x4a2   :  { %v181_v17 = vpop.xlane.xlu0 %180 }
 0x4a3   :  { %v182_v18 = vsel %vm174_vm0, %v181_v17, %v168_v6 }
 0x4a4   :  { %v193_v20 = vmul.f32 %v185_v10, %v182_v18 }
 0x4a6   :  { %194 = vadd.xlane.f32.xlu0 %v193_v20  ;;  %v191_v21 = vpop.xlane.xlu1 %190 }
 0x4a7   :  { %v192_v23 = vsel %vm188_vm1, %v191_v21, %v178_v14 }
 0x4a8   :  { %v202_v24 = vmul.f32 %v198_v22, %v192_v23 }
 0x4aa   :  { %203 = vadd.xlane.f32.xlu1 %v202_v24 }
 0x533   :  { %v195_v25 = vpop.xlane.xlu0 %194 }
 0x534   :  { %v196_v26 = vsel %vm188_vm1, %v195_v25, %v182_v18 }
 0x535   :  { %v206_v27 = vmul.f32 %v198_v22, %v196_v26 }
 0x537   :  { %207 = vadd.xlane.f32.xlu0 %v206_v27  ;;  %v204_v28 = vpop.xlane.xlu1 %203 }
 0x538   :  { %v205_v29 = vsel %vm201_vm2, %v204_v28, %v192_v23 }
 0x539   :  { %v211_v30 = vmul.f32 %v311_v15, %v205_v29 }
 0x53b   :  { %v213_v31 = vsel %vm212_vm3, %v205_v29, %v211_v30 }
 0x53c   :  { %251 = vst [vmem:[%s337_s1] sm:$0xff] %v213_v31 }
 0x5c4   :  { %v208_v32 = vpop.xlane.xlu0 %207 }
 0x5c5   :  { %v209_v33 = vsel %vm201_vm2, %v208_v32, %v196_v26 }
 0x5c6   :  { %v216_v34 = vmul.f32 %v308_v13, %v209_v33 }
 0x5c8   :  { %v218_v35 = vsel %vm217_vm4, %v209_v33, %v216_v34 }
 0x5c9   :  { %253 = vst [vmem:[%s337_s1 + $0x8] sm:$0xff] %v218_v35 }

// kernel: custom-call.13
= control target key start
LH: loop header
LB: loop body
LE: loop exit
PB: predicated region body
PF: predicated region fallthrough
CT: control target
= control target key end

     0   :  { %v38_v0 = vlaneseq  ;;  %v248_v9 = vmov -1.0   ;;  %v249_v53 = vmov 0.0   ;;  %s303_s0 = inlined_call_operand.vmem [shape: f32[1,10,10], index: 0, kind: input, shape index: {}]   ;;  %s304_s1 = inlined_call_operand.vmem [shape: f32[1,10,10], index: 1, kind: output, shape index: {}]  }
   0x1   :  { %v31_v1 = vld [vmem:[%s303_s0] sm:$0xff]  ;;  %v33_v36 = vld [vmem:[%s303_s0 + $0x8] sm:$0xff] }
   0x2   :  { %v263_v2 = vand.u32 127, %v38_v0  ;;  %v42_v3 = vshrl.u32 %v38_v0, 7 }
   0x4   :  { %vm44_vm0 = vcmp.eq.s32.totalorder %v42_v3, %v263_v2  ;;  %vm40_vm1 = vcmp.lt.s32.totalorder %v263_v2, 10  ;;  %vm49_vm2 = vcmp.ge.s32.totalorder %v42_v3, %v263_v2  ;;  %vm79_vm4 = vcmp.eq.s32.totalorder %v263_v2, 0 }
   0x5   :  { %v46_v4 = vsel %vm44_vm0, %v31_v1, 0.0  ;;  %vm50_vm3 = vmand %vm49_vm2, %vm40_vm1  ;;  %vm76_vm5 = vcmp.eq.s32.totalorder %v263_v2, %v42_v3  ;;  %v80_v10 = vsel %vm79_vm4, 1.0, %v248_v9  ;;  %vm94_vm6 = vcmp.eq.s32.totalorder %v263_v2, 1 }
   0x6   :  { %47 = vadd.xlane.f32.xlu0 %v46_v4  ;;  %v51_v6 = vsel %vm50_vm3, %v31_v1, 0.0  ;;  %v81_v11 = vsel %vm76_vm5, %v80_v10, 0.0  ;;  %vm104_vm7 = vcmp.eq.s32.totalorder %v263_v2, 2  ;;  %vm114_vm8 = vcmp.eq.s32.totalorder %v263_v2, 3 }
   0x7   :  { %vm124_vm9 = vcmp.eq.s32.totalorder %v263_v2, 4  ;;  %v59_v31 = vadd.s32 8, %v42_v3  ;;  %vm134_vm11 = vcmp.eq.s32.totalorder %v263_v2, 5  ;;  %vm144_vm14 = vcmp.eq.s32.totalorder %v263_v2, 6 }
   0x8   :  { %vm154_vm0 = vcmp.eq.s32.totalorder %v263_v2, 7  ;;  %vm178_vm2 = vcmp.eq.s32.totalorder %v263_v2, 9 }
   0x9   :  { %vm60_vm10 = vcmp.eq.s32.totalorder %v59_v31, %v263_v2  ;;  %vm65_vm12 = vcmp.ge.s32.totalorder %v59_v31, %v263_v2  ;;  %vm87_vm15 = vcmp.eq.s32.totalorder %v263_v2, %v59_v31 }
   0xa   :  { %v62_v37 = vsel %vm60_vm10, %v33_v36, 0.0  ;;  %vm66_vm13 = vmand %vm65_vm12, %vm40_vm1  ;;  %v88_v54 = vsel %vm87_vm15, -1.0, %v249_v53  ;;  %vm164_vm1 = vcmp.eq.s32.totalorder %v263_v2, 8 }
   0xb   :  { %v67_v44 = vsel %vm66_vm13, %v33_v36, 0.0 }
  0x93   :  { %v266_v5 = vpop.xlane.xlu0 %47 }
  0x94   :  { %244 = vrcp.f32 %v266_v5  ;;  %vm189_vm4 = vweird.f32 %v266_v5 }
  0x9e   :  { %v273_v7 = vpop.eup %244 }
  0x9f   :  { %v53_v8 = vmul.f32 %v273_v7, %v51_v6 }
  0xa1   :  { %54 = vst [vmem:[#allocation2] sm:$0xff] %v53_v8 }
  0xa8   :  { %v90_v12 = vld [vmem:[#allocation2 + $0x1] ss:$0 sm:$0xff]  ;;  %v100_v15 = vld [vmem:[#allocation2 + $0x2] ss:$0 sm:$0xff]  ;;  %v110_v20 = vld [vmem:[#allocation2 + $0x3] ss:$0 sm:$0xff] }
  0xa9   :  { %v91_v13 = vxor.u32 2147483648, %v90_v12  ;;  %v101_v17 = vxor.u32 2147483648, %v100_v15  ;;  %v111_v22 = vxor.u32 2147483648, %v110_v20  ;;  %v120_v25 = vld [vmem:[#allocation2 + $0x4] ss:$0 sm:$0xff] }
  0xaa   :  { %v121_v27 = vxor.u32 2147483648, %v120_v25  ;;  %v130_v30 = vld [vmem:[#allocation2 + $0x5] ss:$0 sm:$0xff]  ;;  %v140_v38 = vld [vmem:[#allocation2 + $0x6] ss:$0 sm:$0xff] }
  0xab   :  { %v95_v14 = vmul.f32 %v91_v13, %v81_v11  ;;  %v131_v33 = vxor.u32 2147483648, %v130_v30  ;;  %v141_v40 = vxor.u32 2147483648, %v140_v38  ;;  %v150_v47 = vld [vmem:[#allocation2 + $0x7] ss:$0 sm:$0xff] }
  0xac   :  { %v151_v50 = vxor.u32 2147483648, %v150_v47 }
  0xad   :  { %96 = vadd.xlane.f32.xlu0 %v95_v14 }
 0x13a   :  { %v97_v16 = vpop.xlane.xlu0 %96 }
 0x13b   :  { %v98_v18 = vsel %vm94_vm6, %v97_v16, %v81_v11 }
 0x13c   :  { %v105_v19 = vmul.f32 %v101_v17, %v98_v18 }
 0x13e   :  { %106 = vadd.xlane.f32.xlu1 %v105_v19 }
 0x1cb   :  { %v107_v21 = vpop.xlane.xlu1 %106 }
 0x1cc   :  { %v108_v23 = vsel %vm104_vm7, %v107_v21, %v98_v18 }
 0x1cd   :  { %v115_v24 = vmul.f32 %v111_v22, %v108_v23 }
 0x1cf   :  { %116 = vadd.xlane.f32.xlu1 %v115_v24 }
 0x25c   :  { %v117_v26 = vpop.xlane.xlu1 %116 }
 0x25d   :  { %v118_v28 = vsel %vm114_vm8, %v117_v26, %v108_v23 }
 0x25e   :  { %v125_v29 = vmul.f32 %v121_v27, %v118_v28 }
 0x260   :  { %126 = vadd.xlane.f32.xlu0 %v125_v29 }
 0x2ed   :  { %v127_v32 = vpop.xlane.xlu0 %126 }
 0x2ee   :  { %v128_v34 = vsel %vm124_vm9, %v127_v32, %v118_v28 }
 0x2ef   :  { %v135_v35 = vmul.f32 %v131_v33, %v128_v34 }
 0x2f1   :  { %136 = vadd.xlane.f32.xlu1 %v135_v35 }
 0x2f5   :  { %63 = vadd.xlane.f32.xlu1 %v62_v37 }
 0x37e   :  { %v137_v39 = vpop.xlane.xlu1 %136 }
 0x37f   :  { %v138_v41 = vsel %vm134_vm11, %v137_v39, %v128_v34 }
 0x380   :  { %v145_v42 = vmul.f32 %v141_v40, %v138_v41 }
 0x382   :  { %146 = vadd.xlane.f32.xlu0 %v145_v42  ;;  %v64_v43 = vpop.xlane.xlu1 %63 }
 0x383   :  { %246 = vrcp.f32 %v64_v43  ;;  %vm194_vm3 = vweird.f32 %v64_v43 }
 0x38d   :  { %v247_v45 = vpop.eup %246 }
 0x38e   :  { %v69_v46 = vmul.f32 %v247_v45, %v67_v44 }
 0x390   :  { %70 = vst [vmem:[#allocation2 + $0x8] sm:$0xff] %v69_v46 }
 0x397   :  { %v160_v48 = vld [vmem:[#allocation2 + $0x8] ss:$0 sm:$0xff]  ;;  %v174_v59 = vld [vmem:[#allocation2 + $0x9] ss:$0 sm:$0xff] }
 0x398   :  { %v161_v51 = vxor.u32 2147483648, %v160_v48  ;;  %v175_v62 = vxor.u32 2147483648, %v174_v59 }
 0x39a   :  { %v169_v56 = vmul.f32 %v161_v51, %v88_v54 }
 0x40f   :  { %v147_v49 = vpop.xlane.xlu0 %146 }
 0x410   :  { %v148_v52 = vsel %vm144_vm14, %v147_v49, %v138_v41 }
 0x411   :  { %v155_v55 = vmul.f32 %v151_v50, %v148_v52 }
 0x413   :  { %156 = vadd.xlane.f32.xlu0 %v155_v55 }
 0x417   :  { %170 = vadd.xlane.f32.xlu0 %v169_v56 }
 0x4a0   :  { %v157_v57 = vpop.xlane.xlu0 %156 }
 0x4a1   :  { %v158_v58 = vsel %vm154_vm0, %v157_v57, %v148_v52 }
 0x4a2   :  { %v165_v60 = vmul.f32 %v161_v51, %v158_v58 }
 0x4a4   :  { %v171_v61 = vpop.xlane.xlu0 %170  ;;  %166 = vadd.xlane.f32.xlu1 %v165_v60 }
 0x4a5   :  { %v172_v63 = vsel %vm164_vm1, %v171_v61, %v88_v54 }
 0x4a6   :  { %v183_v0 = vmul.f32 %v175_v62, %v172_v63 }
 0x4a8   :  { %184 = vadd.xlane.f32.xlu0 %v183_v0 }
 0x531   :  { %v167_v1 = vpop.xlane.xlu1 %166 }
 0x532   :  { %v168_v3 = vsel %vm164_vm1, %v167_v1, %v158_v58 }
 0x533   :  { %v179_v4 = vmul.f32 %v175_v62, %v168_v3 }
 0x535   :  { %v185_v6 = vpop.xlane.xlu0 %184  ;;  %180 = vadd.xlane.f32.xlu1 %v179_v4 }
 0x536   :  { %v186_v8 = vsel %vm178_vm2, %v185_v6, %v172_v63 }
 0x537   :  { %v193_v9 = vmul.f32 %v247_v45, %v186_v8 }
 0x539   :  { %v195_v10 = vsel %vm194_vm3, %v186_v8, %v193_v9 }
 0x53a   :  { %230 = vst [vmem:[%s304_s1 + $0x8] sm:$0xff] %v195_v10 }
 0x5c2   :  { %v181_v11 = vpop.xlane.xlu1 %180 }
 0x5c3   :  { %v182_v12 = vsel %vm178_vm2, %v181_v11, %v168_v3 }
 0x5c4   :  { %v188_v13 = vmul.f32 %v273_v7, %v182_v12 }
 0x5c6   :  { %v190_v14 = vsel %vm189_vm4, %v182_v12, %v188_v13 }
 0x5c7   :  { %228 = vst [vmem:[%s304_s1] sm:$0xff] %v190_v14 }

// kernel: aa_forward.1
= control target key start
LH: loop header
LB: loop body
LE: loop exit
PB: predicated region body
PF: predicated region fallthrough
CT: control target
= control target key end

     0   :  { %v573_v0 = vmov 0.0|0.0   ;;  %vm574_vm0 = vmmov 0   ;;  %v575_v6 = vmov 0.0   ;;  %vm125_vm1 = vcmask 1043456   ;;  %s857_s1 = inlined_call_operand.vmem [shape: f32[100,128], index: 1, kind: input, shape index: {}]   ;;  %s858_s0 = inlined_call_operand.vmem [shape: f32[200,100], index: 0, kind: input, shape index: {}]   ;;  %s859_s2 = inlined_call_operand.vmem [shape: f32[200,128], index: 2, kind: output, shape index: {}]  }
   0x1   :  { %538 = vmatprep.subr.bf16.mxu0 %v573_v0  ;;  %v36_v1 = vld [vmem:[%s857_s1] sm:$0xff]  ;;  %v37_v2 = vld [vmem:[%s857_s1 + $0x8] sm:$0xff]  ;;  %556 = vmatprep.subr.bf16.mxu1 %v573_v0  ;;  %v38_v3 = vld [vmem:[%s857_s1 + $0x10] sm:$0xff]  ;;  %vm49_vm2 = vcmask 818176  }
   0x2   :  { %v539_v4 = vpack.c.bf16 %v37_v2, %v36_v1  ;;  %v39_v5 = vld [vmem:[%s857_s1 + $0x18] sm:$0xff]  ;;  %463 = vmatprep.mubr.msk.f32.mxu0 %vm574_vm0, %v575_v6  ;;  %502 = vmatprep.mubr.msk.f32.mxu1 %vm574_vm0, %v575_v6  ;;  %v40_v8 = vld [vmem:[%s857_s1 + $0x20] sm:$0xff]  ;;  %v41_v9 = vld [vmem:[%s857_s1 + $0x28] sm:$0xff] }
   0x3   :  { %v542_v7 = vpack.c.bf16 %v39_v5, %v38_v3  ;;  %v545_v10 = vpack.c.bf16 %v41_v9, %v40_v8  ;;  %v42_v11 = vld [vmem:[%s857_s1 + $0x30] sm:$0xff]  ;;  %v43_v12 = vld [vmem:[%s857_s1 + $0x38] sm:$0xff]  ;;  %v44_v14 = vld [vmem:[%s857_s1 + $0x40] sm:$0xff] }
   0x4   :  { %540 = vmatpush3.bf16.msra.mxu0 %v539_v4  ;;  %563 = vmatpush3.bf16.msra.mxu1 %v539_v4  ;;  %v548_v13 = vpack.c.bf16 %v43_v12, %v42_v11  ;;  %v45_v15 = vld [vmem:[%s857_s1 + $0x48] sm:$0xff]  ;;  %v46_v17 = vld [vmem:[%s857_s1 + $0x50] sm:$0xff]  ;;  %v47_v18 = vld [vmem:[%s857_s1 + $0x58] sm:$0xff] }
   0x5   :  { %541 = vmatprep.subr.bf16.mxu0 %v573_v0  ;;  %557 = vmatprep.subr.bf16.mxu1 %v573_v0  ;;  %v551_v16 = vpack.c.bf16 %v45_v15, %v44_v14  ;;  %v554_v19 = vpack.c.bf16 %v47_v18, %v46_v17  ;;  %v48_v20 = vld [vmem:[%s857_s1 + $0x60] sm:$0xf]  ;;  %v24_v22 = vld [vmem:[%s858_s0 + $0x68] sm:$0xff]  ;;  %v25_v24 = vld [vmem:[%s858_s0 + $0x70] sm:$0xff] }
   0x6   :  { %v11_v21 = vld [vmem:[%s858_s0] sm:$0xff]  ;;  %v12_v23 = vld [vmem:[%s858_s0 + $0x8] sm:$0xff]  ;;  %v13_v25 = vld [vmem:[%s858_s0 + $0x10] sm:$0xff] }
   0x7   :  { %v26_v26 = vld [vmem:[%s858_s0 + $0x78] sm:$0xff]  ;;  %v27_v28 = vld [vmem:[%s858_s0 + $0x80] sm:$0xff]  ;;  %v28_v30 = vld [vmem:[%s858_s0 + $0x88] sm:$0xff] }
   0x8   :  { %543 = vmatpush3.bf16.msra.mxu0 %v542_v7  ;;  %564 = vmatpush3.bf16.msra.mxu1 %v542_v7  ;;  %v14_v27 = vld [vmem:[%s858_s0 + $0x18] sm:$0xff]  ;;  %v15_v29 = vld [vmem:[%s858_s0 + $0x20] sm:$0xff]  ;;  %v16_v31 = vld [vmem:[%s858_s0 + $0x28] sm:$0xff] }
   0x9   :  { %544 = vmatprep.subr.bf16.mxu0 %v573_v0  ;;  %558 = vmatprep.subr.bf16.mxu1 %v573_v0  ;;  %v29_v32 = vld [vmem:[%s858_s0 + $0x90] sm:$0xff]  ;;  %v30_v34 = vld [vmem:[%s858_s0 + $0x98] sm:$0xff]  ;;  %v31_v36 = vld [vmem:[%s858_s0 + $0xa0] sm:$0xff] }
   0xa   :  { %v17_v33 = vld [vmem:[%s858_s0 + $0x30] sm:$0xff]  ;;  %v18_v35 = vld [vmem:[%s858_s0 + $0x38] sm:$0xff]  ;;  %v19_v37 = vld [vmem:[%s858_s0 + $0x40] sm:$0xff] }
   0xb   :  { %v32_v38 = vld [vmem:[%s858_s0 + $0xa8] sm:$0xff]  ;;  %v33_v40 = vld [vmem:[%s858_s0 + $0xb0] sm:$0xff]  ;;  %v34_v42 = vld [vmem:[%s858_s0 + $0xb8] sm:$0xff] }
   0xc   :  { %546 = vmatpush3.bf16.msra.mxu0 %v545_v10  ;;  %565 = vmatpush3.bf16.msra.mxu1 %v545_v10  ;;  %v20_v39 = vld [vmem:[%s858_s0 + $0x48] sm:$0xff]  ;;  %v21_v41 = vld [vmem:[%s858_s0 + $0x50] sm:$0xff]  ;;  %v22_v43 = vld [vmem:[%s858_s0 + $0x58] sm:$0xff] }
   0xd   :  { %547 = vmatprep.subr.bf16.mxu0 %v573_v0  ;;  %559 = vmatprep.subr.bf16.mxu1 %v573_v0  ;;  %v35_v44 = vld [vmem:[%s858_s0 + $0xc0] sm:$0xff] }
   0xe   :  { %v23_v45 = vld [vmem:[%s858_s0 + $0x60] sm:$0xff] }
  0x10   :  { %549 = vmatpush3.bf16.msra.mxu0 %v548_v13  ;;  %566 = vmatpush3.bf16.msra.mxu1 %v548_v13 }
  0x11   :  { %550 = vmatprep.subr.bf16.mxu0 %v573_v0  ;;  %560 = vmatprep.subr.bf16.mxu1 %v573_v0 }
  0x14   :  { %552 = vmatpush3.bf16.msra.mxu0 %v551_v16  ;;  %567 = vmatpush3.bf16.msra.mxu1 %v551_v16 }
  0x15   :  { %553 = vmatprep.subr.bf16.mxu0 %v573_v0  ;;  %561 = vmatprep.subr.bf16.mxu1 %v573_v0 }
  0x18   :  { %555 = vmatpush3.bf16.msra.mxu0 %v554_v19  ;;  %568 = vmatpush3.bf16.msra.mxu1 %v554_v19 }
  0x19   :  { %461 = vmatprep.subr.mxu0 %v575_v6  ;;  %562 = vmatprep.subr.mxu1 %v575_v6 }
  0x1c   :  { %462 = vmatpush3.msk.msra.mxu0 %vm125_vm1, %v48_v20  ;;  %569 = vmatpush3.msk.msra.mxu1 %vm125_vm1, %v48_v20 }
  0x1d   :  { %464 = vmatmul.mubr.msk.f32.vlgmr.msra.gmra.mrb[0].mxu0 %vm49_vm2, %v11_v21  ;;  %503 = vmatmul.mubr.msk.f32.vlgmr.msra.gmra.mrb[0].mxu1 %vm49_vm2, %v24_v22 }
  0x1e   :  { %466 = vmatprep.mubr.msk.f32.mxu0 %vm574_vm0, %v575_v6  ;;  %505 = vmatprep.mubr.msk.f32.mxu1 %vm574_vm0, %v575_v6 }
  0x21   :  { %467 = vmatmul.mubr.msk.f32.gmra.mrb[2].mxu0 %vm49_vm2, %v12_v23  ;;  %506 = vmatmul.mubr.msk.f32.gmra.mrb[2].mxu1 %vm49_vm2, %v25_v24 }
  0x22   :  { %469 = vmatprep.mubr.msk.f32.mxu0 %vm574_vm0, %v575_v6  ;;  %508 = vmatprep.mubr.msk.f32.mxu1 %vm574_vm0, %v575_v6 }
  0x25   :  { %470 = vmatmul.mubr.msk.f32.gmra.mrb[4].mxu0 %vm49_vm2, %v13_v25  ;;  %509 = vmatmul.mubr.msk.f32.gmra.mrb[4].mxu1 %vm49_vm2, %v26_v26 }
  0x26   :  { %472 = vmatprep.mubr.msk.f32.mxu0 %vm574_vm0, %v575_v6  ;;  %511 = vmatprep.mubr.msk.f32.mxu1 %vm574_vm0, %v575_v6 }
  0x29   :  { %473 = vmatmul.mubr.msk.f32.gmra.mrb[6].mxu0 %vm49_vm2, %v14_v27  ;;  %512 = vmatmul.mubr.msk.f32.gmra.mrb[6].mxu1 %vm49_vm2, %v27_v28 }
  0x2a   :  { %475 = vmatprep.mubr.msk.f32.mxu0 %vm574_vm0, %v575_v6  ;;  %514 = vmatprep.mubr.msk.f32.mxu1 %vm574_vm0, %v575_v6 }
  0x2d   :  { %476 = vmatmul.mubr.msk.f32.gmra.mrb[8].mxu0 %vm49_vm2, %v15_v29  ;;  %515 = vmatmul.mubr.msk.f32.gmra.mrb[8].mxu1 %vm49_vm2, %v28_v30 }
  0x2e   :  { %478 = vmatprep.mubr.msk.f32.mxu0 %vm574_vm0, %v575_v6  ;;  %517 = vmatprep.mubr.msk.f32.mxu1 %vm574_vm0, %v575_v6 }
  0x31   :  { %479 = vmatmul.mubr.msk.f32.gmra.mrb[10].mxu0 %vm49_vm2, %v16_v31  ;;  %518 = vmatmul.mubr.msk.f32.gmra.mrb[10].mxu1 %vm49_vm2, %v29_v32 }
  0x32   :  { %481 = vmatprep.mubr.msk.f32.mxu0 %vm574_vm0, %v575_v6  ;;  %520 = vmatprep.mubr.msk.f32.mxu1 %vm574_vm0, %v575_v6 }
  0x35   :  { %482 = vmatmul.mubr.msk.f32.gmra.mrb[12].mxu0 %vm49_vm2, %v17_v33  ;;  %521 = vmatmul.mubr.msk.f32.gmra.mrb[12].mxu1 %vm49_vm2, %v30_v34 }
  0x36   :  { %484 = vmatprep.mubr.msk.f32.mxu0 %vm574_vm0, %v575_v6  ;;  %523 = vmatprep.mubr.msk.f32.mxu1 %vm574_vm0, %v575_v6 }
  0x39   :  { %485 = vmatmul.mubr.msk.f32.gmra.mrb[14].mxu0 %vm49_vm2, %v18_v35  ;;  %524 = vmatmul.mubr.msk.f32.gmra.mrb[14].mxu1 %vm49_vm2, %v31_v36 }
  0x3a   :  { %487 = vmatprep.mubr.msk.f32.mxu0 %vm574_vm0, %v575_v6  ;;  %526 = vmatprep.mubr.msk.f32.mxu1 %vm574_vm0, %v575_v6 }
  0x3d   :  { %488 = vmatmul.mubr.msk.f32.gmra.mrb[16].mxu0 %vm49_vm2, %v19_v37  ;;  %527 = vmatmul.mubr.msk.f32.gmra.mrb[16].mxu1 %vm49_vm2, %v32_v38 }
  0x3e   :  { %490 = vmatprep.mubr.msk.f32.mxu0 %vm574_vm0, %v575_v6  ;;  %529 = vmatprep.mubr.msk.f32.mxu1 %vm574_vm0, %v575_v6 }
  0x41   :  { %491 = vmatmul.mubr.msk.f32.gmra.mrb[18].mxu0 %vm49_vm2, %v20_v39  ;;  %530 = vmatmul.mubr.msk.f32.gmra.mrb[18].mxu1 %vm49_vm2, %v33_v40 }
  0x42   :  { %493 = vmatprep.mubr.msk.f32.mxu0 %vm574_vm0, %v575_v6  ;;  %532 = vmatprep.mubr.msk.f32.mxu1 %vm574_vm0, %v575_v6 }
  0x45   :  { %494 = vmatmul.mubr.msk.f32.gmra.mrb[20].mxu0 %vm49_vm2, %v21_v41  ;;  %533 = vmatmul.mubr.msk.f32.gmra.mrb[20].mxu1 %vm49_vm2, %v34_v42 }
  0x46   :  { %496 = vmatprep.mubr.msk.f32.mxu0 %vm574_vm0, %v575_v6  ;;  %535 = vmatprep.mubr.msk.f32.mxu1 %vm574_vm0, %v575_v6 }
  0x49   :  { %497 = vmatmul.mubr.msk.f32.gmra.mrb[22].mxu0 %vm49_vm2, %v22_v43  ;;  %536 = vmatmul.mubr.msk.f32.gmra.mrb[22].mxu1 %vm49_vm2, %v35_v44 }
  0x4a   :  { %499 = vmatprep.mubr.msk.f32.mxu0 %vm574_vm0, %v575_v6 }
  0x4d   :  { %500 = vmatmul.mubr.msk.f32.gmra.mrb[24].mxu0 %vm49_vm2, %v23_v45 }
  0xf0   :  { %v195_v46 = vpop.f32.mrb[0].mxu0  ;;  %v260_v47 = vpop.f32.mrb[0].mxu1 }
  0xf1   :  { %v319_v48 = vmax.f32 %v195_v46, 0.0  ;;  %v465_v49 = vpop.f32.mrb[1].mxu0  ;;  %v332_v50 = vmax.f32 %v260_v47, 0.0  ;;  %v504_v51 = vpop.f32.mrb[1].mxu1 }
  0xf3   :  { %344 = vst [vmem:[%s859_s2] sm:$0xff] %v319_v48  ;;  %357 = vst [vmem:[%s859_s2 + $0x68] sm:$0xff] %v332_v50 }
  0xf4   :  { %v200_v52 = vpop.f32.mrb[2].mxu0  ;;  %v265_v53 = vpop.f32.mrb[2].mxu1 }
  0xf5   :  { %v320_v54 = vmax.f32 %v200_v52, 0.0  ;;  %v468_v55 = vpop.f32.mrb[3].mxu0  ;;  %v333_v56 = vmax.f32 %v265_v53, 0.0  ;;  %v507_v57 = vpop.f32.mrb[3].mxu1 }
  0xf7   :  { %345 = vst [vmem:[%s859_s2 + $0x8] sm:$0xff] %v320_v54  ;;  %358 = vst [vmem:[%s859_s2 + $0x70] sm:$0xff] %v333_v56 }
  0xf8   :  { %v205_v58 = vpop.f32.mrb[4].mxu0  ;;  %v270_v59 = vpop.f32.mrb[4].mxu1 }
  0xf9   :  { %v321_v60 = vmax.f32 %v205_v58, 0.0  ;;  %v471_v61 = vpop.f32.mrb[5].mxu0  ;;  %v334_v62 = vmax.f32 %v270_v59, 0.0  ;;  %v510_v63 = vpop.f32.mrb[5].mxu1 }
  0xfb   :  { %346 = vst [vmem:[%s859_s2 + $0x10] sm:$0xff] %v321_v60  ;;  %359 = vst [vmem:[%s859_s2 + $0x78] sm:$0xff] %v334_v62 }
  0xfc   :  { %v210_v0 = vpop.f32.mrb[6].mxu0  ;;  %v275_v1 = vpop.f32.mrb[6].mxu1 }
  0xfd   :  { %v322_v2 = vmax.f32 %v210_v0, 0.0  ;;  %v474_v3 = vpop.f32.mrb[7].mxu0  ;;  %v335_v4 = vmax.f32 %v275_v1, 0.0  ;;  %v513_v5 = vpop.f32.mrb[7].mxu1 }
  0xff   :  { %347 = vst [vmem:[%s859_s2 + $0x18] sm:$0xff] %v322_v2  ;;  %360 = vst [vmem:[%s859_s2 + $0x80] sm:$0xff] %v335_v4 }
 0x100   :  { %v215_v6 = vpop.f32.mrb[8].mxu0  ;;  %v280_v7 = vpop.f32.mrb[8].mxu1 }
 0x101   :  { %v323_v8 = vmax.f32 %v215_v6, 0.0  ;;  %v477_v9 = vpop.f32.mrb[9].mxu0  ;;  %v336_v10 = vmax.f32 %v280_v7, 0.0  ;;  %v516_v11 = vpop.f32.mrb[9].mxu1 }
 0x103   :  { %348 = vst [vmem:[%s859_s2 + $0x20] sm:$0xff] %v323_v8  ;;  %361 = vst [vmem:[%s859_s2 + $0x88] sm:$0xff] %v336_v10 }
 0x104   :  { %v220_v12 = vpop.f32.mrb[10].mxu0  ;;  %v285_v13 = vpop.f32.mrb[10].mxu1 }
 0x105   :  { %v324_v14 = vmax.f32 %v220_v12, 0.0  ;;  %v480_v15 = vpop.f32.mrb[11].mxu0  ;;  %v337_v16 = vmax.f32 %v285_v13, 0.0  ;;  %v519_v17 = vpop.f32.mrb[11].mxu1 }
 0x107   :  { %349 = vst [vmem:[%s859_s2 + $0x28] sm:$0xff] %v324_v14  ;;  %362 = vst [vmem:[%s859_s2 + $0x90] sm:$0xff] %v337_v16 }
 0x108   :  { %v225_v18 = vpop.f32.mrb[12].mxu0  ;;  %v290_v19 = vpop.f32.mrb[12].mxu1 }
 0x109   :  { %v325_v20 = vmax.f32 %v225_v18, 0.0  ;;  %v483_v21 = vpop.f32.mrb[13].mxu0  ;;  %v338_v22 = vmax.f32 %v290_v19, 0.0  ;;  %v522_v23 = vpop.f32.mrb[13].mxu1 }
 0x10b   :  { %350 = vst [vmem:[%s859_s2 + $0x30] sm:$0xff] %v325_v20  ;;  %363 = vst [vmem:[%s859_s2 + $0x98] sm:$0xff] %v338_v22 }
 0x10c   :  { %v230_v24 = vpop.f32.mrb[14].mxu0  ;;  %v295_v25 = vpop.f32.mrb[14].mxu1 }
 0x10d   :  { %v326_v26 = vmax.f32 %v230_v24, 0.0  ;;  %v486_v27 = vpop.f32.mrb[15].mxu0  ;;  %v339_v28 = vmax.f32 %v295_v25, 0.0  ;;  %v525_v29 = vpop.f32.mrb[15].mxu1 }
 0x10f   :  { %351 = vst [vmem:[%s859_s2 + $0x38] sm:$0xff] %v326_v26  ;;  %364 = vst [vmem:[%s859_s2 + $0xa0] sm:$0xff] %v339_v28 }
 0x110   :  { %v235_v30 = vpop.f32.mrb[16].mxu0  ;;  %v300_v31 = vpop.f32.mrb[16].mxu1 }
 0x111   :  { %v327_v32 = vmax.f32 %v235_v30, 0.0  ;;  %v489_v33 = vpop.f32.mrb[17].mxu0  ;;  %v340_v34 = vmax.f32 %v300_v31, 0.0  ;;  %v528_v35 = vpop.f32.mrb[17].mxu1 }
 0x113   :  { %352 = vst [vmem:[%s859_s2 + $0x40] sm:$0xff] %v327_v32  ;;  %365 = vst [vmem:[%s859_s2 + $0xa8] sm:$0xff] %v340_v34 }
 0x114   :  { %v240_v36 = vpop.f32.mrb[18].mxu0  ;;  %v305_v37 = vpop.f32.mrb[18].mxu1 }
 0x115   :  { %v328_v38 = vmax.f32 %v240_v36, 0.0  ;;  %v492_v39 = vpop.f32.mrb[19].mxu0  ;;  %v341_v40 = vmax.f32 %v305_v37, 0.0  ;;  %v531_v41 = vpop.f32.mrb[19].mxu1 }
 0x117   :  { %353 = vst [vmem:[%s859_s2 + $0x48] sm:$0xff] %v328_v38  ;;  %366 = vst [vmem:[%s859_s2 + $0xb0] sm:$0xff] %v341_v40 }
 0x118   :  { %v245_v42 = vpop.f32.mrb[20].mxu0  ;;  %v310_v43 = vpop.f32.mrb[20].mxu1 }
 0x119   :  { %v329_v44 = vmax.f32 %v245_v42, 0.0  ;;  %v495_v45 = vpop.f32.mrb[21].mxu0  ;;  %v342_v46 = vmax.f32 %v310_v43, 0.0  ;;  %v534_v47 = vpop.f32.mrb[21].mxu1 }
 0x11b   :  { %354 = vst [vmem:[%s859_s2 + $0x50] sm:$0xff] %v329_v44  ;;  %367 = vst [vmem:[%s859_s2 + $0xb8] sm:$0xff] %v342_v46 }
 0x11c   :  { %v250_v48 = vpop.f32.mrb[22].mxu0  ;;  %v315_v49 = vpop.f32.mrb[22].mxu1 }
 0x11d   :  { %v330_v50 = vmax.f32 %v250_v48, 0.0  ;;  %v498_v51 = vpop.f32.mrb[23].mxu0  ;;  %v343_v52 = vmax.f32 %v315_v49, 0.0  ;;  %v537_v53 = vpop.f32.mrb[23].mxu1 }
 0x11f   :  { %355 = vst [vmem:[%s859_s2 + $0x58] sm:$0xff] %v330_v50  ;;  %368 = vst [vmem:[%s859_s2 + $0xc0] sm:$0xff] %v343_v52 }
 0x120   :  { %v255_v54 = vpop.f32.mrb[24].mxu0 }
 0x121   :  { %v331_v55 = vmax.f32 %v255_v54, 0.0  ;;  %v501_v56 = vpop.f32.mrb[25].mxu0 }
 0x123   :  { %356 = vst [vmem:[%s859_s2 + $0x60] sm:$0xff] %v331_v55 }

</bundles_post_ra>
